<compile_context>
chip_gen: v7x
topology: tpu7x:2x2x1
jax: 0.10.0
libtpu: 0.0.40
codegen_flags: <defaults>
</compile_context>

<pallas_src>
import functools

import jax
import jax.numpy as jnp
from jax.experimental import pallas as pl
from jax.experimental.pallas import tpu as pltpu


# ----------------------------------------------------------------------------
# hardware-aware defaults
# ----------------------------------------------------------------------------

@functools.lru_cache(maxsize=None)
def _tpu_defaults():
    kind = ""
    try:
        kind = jax.devices()[0].device_kind.lower()
    except Exception:
        pass
    try:
        vmem_cap = int(pltpu.get_tpu_info().vmem_capacity_bytes)
    except Exception:
        vmem_cap = 64 * 1024 * 1024            # conservative (v7x-sized) fallback
    # Leave headroom under physical VMEM: ~48 MiB on v7x (64 MiB / TC),
    # ~96 MiB on v5e / v6e (128 MiB).
    vmem_limit = max(32 * 1024 * 1024, min(3 * vmem_cap // 4, 96 * 1024 * 1024))
    # v6e needs ~670 FLOP/byte to be MXU-bound and has the VMEM for 1024 tiles;
    # 512 tiles already reach compute-bound on v5e/v7x (and fit v7x's VMEM).
    if "v6" in kind:
        tm = tn = 1024
    else:
        tm = tn = 512
    return {"tm": tm, "tn": tn, "tk": 512, "vmem": vmem_limit}


# ----------------------------------------------------------------------------
# helpers
# ----------------------------------------------------------------------------

def _pad_axis(x, axis, tile):
    pad = (-x.shape[axis]) % tile
    if pad == 0:
        return x
    widths = [(0, 0)] * x.ndim
    widths[axis] = (0, pad)
    return jnp.pad(x, widths)


def _pick_tile(dim, target):
    # full dim if it fits in one tile (full-extent blocks are always legal),
    # otherwise the (8,128)-aligned target tile (inputs get zero-padded).
    return dim if dim <= target else target


# ----------------------------------------------------------------------------
# Tiled matmul (optional fused GELU epilogue)
# ----------------------------------------------------------------------------

def _matmul_kernel(x_ref, w_ref, o_ref, acc_ref, *, activation):
    @pl.when(pl.program_id(2) == 0)
    def _():
        acc_ref[...] = jnp.zeros_like(acc_ref)

    acc_ref[...] += jnp.dot(x_ref[...], w_ref[...],
                            preferred_element_type=jnp.float32)

    @pl.when(pl.program_id(2) == pl.num_programs(2) - 1)
    def _():
        acc = acc_ref[...]
        if activation == "gelu":   # exact (erf) GELU like torch.nn.functional.gelu
            acc = 0.5 * acc * (1.0 + jax.lax.erf(acc * 0.7071067811865476))
        o_ref[...] = acc.astype(o_ref.dtype)


def pallas_matmul(x, w, *, activation=None, out_dtype=None,
                  tm=None, tn=None, tk=None):
    """x: (M, K), w: (K, N) -> (M, N).  bf16 operands, f32 accumulation."""
    M, K = x.shape
    K2, N = w.shape
    assert K == K2
    cfg = _tpu_defaults()
    tm = tm or cfg["tm"]
    tn = tn or cfg["tn"]
    tk = tk or cfg["tk"]
    out_dtype = out_dtype or x.dtype
    tm, tn, tk = _pick_tile(M, tm), _pick_tile(N, tn), _pick_tile(K, tk)
    xp = _pad_axis(_pad_axis(x, 0, tm), 1, tk)
    wp = _pad_axis(_pad_axis(w, 0, tk), 1, tn)
    Mp, Kp = xp.shape
    Np = wp.shape[1]
    n_m, n_n, n_k = Mp // tm, Np // tn, Kp // tk

    # Skinny-M, many-K-steps (decode-like): deepen pipelining of the streamed
    # weight block so the exposed weight-DMA latency is hidden.
    w_spec_kwargs = {}
    if n_m <= 2 and n_k >= 3:
        w_spec_kwargs["pipeline_mode"] = pl.Buffered(3)

    out = pl.pallas_call(
        functools.partial(_matmul_kernel, activation=activation),
        out_shape=jax.ShapeDtypeStruct((Mp, Np), out_dtype),
        grid=(n_m, n_n, n_k),
        in_specs=[pl.BlockSpec((tm, tk), lambda i, j, k: (i, k)),
                  pl.BlockSpec((tk, tn), lambda i, j, k: (k, j), **w_spec_kwargs)],
        out_specs=pl.BlockSpec((tm, tn), lambda i, j, k: (i, j)),
        scratch_shapes=[pltpu.VMEM((tm, tn), jnp.float32)],
        compiler_params=pltpu.CompilerParams(
            dimension_semantics=("parallel", "parallel", "arbitrary"),
            vmem_limit_bytes=cfg["vmem"]),
    )(xp, wp)
    if (Mp, Np) != (M, N):
        out = out[:M, :N]
    return out


# ----------------------------------------------------------------------------
# Tiled matmul with fused residual-add + RMSNorm epilogue
#   out = rmsnorm(res + x @ w, gamma)
# ----------------------------------------------------------------------------

def _matmul_res_norm_kernel(x_ref, w_ref, r_ref, g_ref, o_ref, acc_ref, *, eps):
    @pl.when(pl.program_id(1) == 0)
    def _():
        acc_ref[...] = jnp.zeros_like(acc_ref)

    acc_ref[...] += jnp.dot(x_ref[...], w_ref[...],
                            preferred_element_type=jnp.float32)

    @pl.when(pl.program_id(1) == pl.num_programs(1) - 1)
    def _():
        h = acc_ref[...] + r_ref[...].astype(jnp.float32)
        ms = jnp.mean(h * h, axis=-1, keepdims=True)
        h = h * jax.lax.rsqrt(ms + eps) * g_ref[...].astype(jnp.float32)
        o_ref[...] = h.astype(o_ref.dtype)


def pallas_matmul_res_norm(x, w, res, gamma, *, eps=1e-5, out_dtype=None,
                           tm=512, tk=None):
    """N (= d_model) is kept whole per tile so the norm sees the full row;
    the grid tiles M (parallel) and K (arbitrary, accumulated).  tm is capped
    at 512: the (tm, D) f32 accumulator + resident residual/weight/output
    blocks stay well under v7x's 64 MiB VMEM even at D = 4096."""
    M, K = x.shape
    K2, D = w.shape
    assert K == K2 and res.shape == (M, D)
    cfg = _tpu_defaults()
    tk = tk or cfg["tk"]
    out_dtype = out_dtype or res.dtype
    tm, tk = _pick_tile(M, tm), _pick_tile(K, tk)
    xp = _pad_axis(_pad_axis(x, 0, tm), 1, tk)
    wp = _pad_axis(w, 0, tk)
    rp = _pad_axis(res, 0, tm)
    Mp, Kp = xp.shape
    g2 = gamma.reshape(1, D).astype(jnp.float32)
    out = pl.pallas_call(
        functools.partial(_matmul_res_norm_kernel, eps=eps),
        out_shape=jax.ShapeDtypeStruct((Mp, D), out_dtype),
        grid=(Mp // tm, Kp // tk),
        in_specs=[pl.BlockSpec((tm, tk), lambda i, k: (i, k)),
                  pl.BlockSpec((tk, D), lambda i, k: (k, 0)),
                  pl.BlockSpec((tm, D), lambda i, k: (i, 0)),
                  pl.BlockSpec((1, D), lambda i, k: (0, 0))],
        out_specs=pl.BlockSpec((tm, D), lambda i, k: (i, 0)),
        scratch_shapes=[pltpu.VMEM((tm, D), jnp.float32)],
        compiler_params=pltpu.CompilerParams(
            dimension_semantics=("parallel", "arbitrary"),
            vmem_limit_bytes=cfg["vmem"]),
    )(xp, wp, rp, g2)
    if Mp != M:
        out = out[:M]
    return out


# ----------------------------------------------------------------------------
# Fused RMSNorm + matmul (ln_final + lm_head):  out = rmsnorm(x, gamma) @ w
# Full-D K block (single K step) so the norm sees the whole row in-kernel;
# this removes the standalone rmsnorm HBM read+write pass.
# ----------------------------------------------------------------------------

def _norm_matmul_kernel(x_ref, g_ref, w_ref, o_ref, *, eps):
    x = x_ref[...].astype(jnp.float32)
    ms = jnp.mean(x * x, axis=-1, keepdims=True)
    xn = (x * jax.lax.rsqrt(ms + eps)
          * g_ref[...].astype(jnp.float32)).astype(w_ref.dtype)
    o_ref[...] = jnp.dot(xn, w_ref[...],
                         preferred_element_type=jnp.float32).astype(o_ref.dtype)


def pallas_norm_matmul(x, gamma, w, *, eps=1e-5, out_dtype=jnp.float32,
                       tm=512, tn=None):
    M, D = x.shape
    D2, N = w.shape
    assert D == D2
    cfg = _tpu_defaults()
    tn = tn or cfg["tn"]
    tm, tn = _pick_tile(M, tm), _pick_tile(N, tn)
    xp = _pad_axis(x, 0, tm)
    wp = _pad_axis(w, 1, tn)
    Mp = xp.shape[0]
    Np = wp.shape[1]
    g2 = gamma.reshape(1, D).astype(jnp.float32)
    out = pl.pallas_call(
        functools.partial(_norm_matmul_kernel, eps=eps),
        out_shape=jax.ShapeDtypeStruct((Mp, Np), out_dtype),
        grid=(Mp // tm, Np // tn),
        in_specs=[pl.BlockSpec((tm, D), lambda i, j: (i, 0)),
                  pl.BlockSpec((1, D), lambda i, j: (0, 0)),
                  pl.BlockSpec((D, tn), lambda i, j: (0, j))],
        out_specs=pl.BlockSpec((tm, tn), lambda i, j: (i, j)),
        compiler_params=pltpu.CompilerParams(
            dimension_semantics=("parallel", "parallel"),
            vmem_limit_bytes=cfg["vmem"]),
    )(xp, g2, wp)
    if (Mp, Np) != (M, N):
        out = out[:M, :N]
    return out


# ----------------------------------------------------------------------------
# Flash-style causal self-attention (online softmax)
# ----------------------------------------------------------------------------

def _flash_attn_kernel(q_ref, k_ref, v_ref, o_ref, q_sc, m_sc, l_sc, acc_sc,
                       *, scale, t, i_axis, j_axis):
    i = pl.program_id(i_axis)   # query-tile index
    j = pl.program_id(j_axis)   # kv-tile index

    @pl.when(j == 0)
    def _():
        # Fold the 1/sqrt(Dh) scale into q once per query tile.
        q_sc[...] = (q_ref[0].astype(jnp.float32) * scale).astype(q_sc.dtype)
        m_sc[...] = jnp.full_like(m_sc, -1e30)
        l_sc[...] = jnp.zeros_like(l_sc)
        acc_sc[...] = jnp.zeros_like(acc_sc)

    def online_softmax_update(masked):
        k = k_ref[0]                      # (tkv, Dh) bf16
        v = v_ref[0]                      # (tkv, Dh) bf16
        # Contract the last dims directly: no (tkv, Dh) transpose / relayout.
        s = jax.lax.dot_general(q_sc[...], k, (((1,), (1,)), ((), ())),
                                preferred_element_type=jnp.float32)
        if masked:
            row = i * t + jax.lax.broadcasted_iota(jnp.int32, s.shape, 0)
            col = j * t + jax.lax.broadcasted_iota(jnp.int32, s.shape, 1)
            s = jnp.where(col <= row, s, -1e30)       # causal mask
        m_prev = m_sc[...]
        m_new = jnp.maximum(m_prev, jnp.max(s, axis=-1, keepdims=True))
        alpha = jnp.exp(m_prev - m_new)
        p = jnp.exp(s - m_new)
        l_sc[...] = alpha * l_sc[...] + jnp.sum(p, axis=-1, keepdims=True)
        acc_sc[...] = alpha * acc_sc[...] + jnp.dot(
            p.astype(v.dtype), v, preferred_element_type=jnp.float32)
        m_sc[...] = m_new

    # Fully-unmasked KV tiles strictly below the causal diagonal: no iota/select.
    @pl.when(j < i)
    def _():
        online_softmax_update(masked=False)

    # Diagonal tile: apply the causal mask.  Tiles above the diagonal (j > i)
    # are skipped entirely and their KV DMA is deduped by the clamped index_map.
    @pl.when(j == i)
    def _():
        online_softmax_update(masked=True)

    @pl.when(j == pl.num_programs(j_axis) - 1)
    def _():
        inv_l = pl.reciprocal(l_sc[...], approx=True)
        o_ref[0] = (acc_sc[...] * inv_l).astype(o_ref.dtype)


def _attn_scratch(t, dh, dtype):
    return [pltpu.VMEM((t, dh), dtype),        # scaled q
            pltpu.VMEM((t, 1), jnp.float32),   # running max
            pltpu.VMEM((t, 1), jnp.float32),   # running denom
            pltpu.VMEM((t, dh), jnp.float32)]  # output accumulator


def pallas_flash_attention_fused(qkv, num_heads, d_head, *, t_seq=256):
    """qkv: (B, S, 3*D) laid out [q heads | k heads | v heads] -> (B, S, D).

    Reads q/k/v straight from the fused projection output and writes the
    attention output in (B, S, D) layout, so no head transposes ever touch HBM.
    Requires d_head % 128 == 0 (lane-aligned blocks on the 3D / D axes)."""
    B, S, threeD = qkv.shape
    D = num_heads * d_head
    assert threeD == 3 * D and d_head % 128 == 0
    t = _pick_tile(S, t_seq)
    qkvp = _pad_axis(qkv, 1, t)
    Sp = qkvp.shape[1]
    H = num_heads
    kern = functools.partial(_flash_attn_kernel, scale=1.0 / (d_head ** 0.5),
                             t=t, i_axis=2, j_axis=3)
    # Column-block h / H+h / 2H+h picks head h's q / k / v slice of the fused
    # activation; jnp.minimum(j, i) dedups DMA of causally-masked KV tiles.
    q_spec = pl.BlockSpec((1, t, d_head), lambda b, h, i, j: (b, i, h))
    k_spec = pl.BlockSpec((1, t, d_head),
                          lambda b, h, i, j: (b, jnp.minimum(j, i), H + h))
    v_spec = pl.BlockSpec((1, t, d_head),
                          lambda b, h, i, j: (b, jnp.minimum(j, i), 2 * H + h))
    o_spec = pl.BlockSpec((1, t, d_head), lambda b, h, i, j: (b, i, h))
    out = pl.pallas_call(
        kern,
        out_shape=jax.ShapeDtypeStruct((B, Sp, D), qkv.dtype),
        grid=(B, H, Sp // t, Sp // t),
        in_specs=[q_spec, k_spec, v_spec],
        out_specs=o_spec,
        scratch_shapes=_attn_scratch(t, d_head, qkv.dtype),
        compiler_params=pltpu.CompilerParams(
            dimension_semantics=("parallel", "parallel", "parallel", "arbitrary"),
            vmem_limit_bytes=_tpu_defaults()["vmem"]),
    )(qkvp, qkvp, qkvp)
    if Sp != S:
        out = out[:, :S]
    return out


def pallas_flash_attention(q, k, v, *, t_seq=256):
    """Fallback path (head-split layout). q, k, v: (B*H, S, Dh) -> (B*H, S, Dh)."""
    BH, S, Dh = q.shape
    t = _pick_tile(S, t_seq)
    qp = _pad_axis(q, 1, t)
    kp = _pad_axis(k, 1, t)
    vp = _pad_axis(v, 1, t)
    Sp = qp.shape[1]
    kern = functools.partial(_flash_attn_kernel, scale=1.0 / (Dh ** 0.5),
                             t=t, i_axis=1, j_axis=2)
    q_spec = pl.BlockSpec((1, t, Dh), lambda b, i, j: (b, i, 0))
    kv_spec = pl.BlockSpec((1, t, Dh), lambda b, i, j: (b, jnp.minimum(j, i), 0))
    out = pl.pallas_call(
        kern,
        out_shape=jax.ShapeDtypeStruct((BH, Sp, Dh), q.dtype),
        grid=(BH, Sp // t, Sp // t),
        in_specs=[q_spec, kv_spec, kv_spec],
        out_specs=q_spec,
        scratch_shapes=_attn_scratch(t, Dh, q.dtype),
        compiler_params=pltpu.CompilerParams(
            dimension_semantics=("parallel", "parallel", "arbitrary"),
            vmem_limit_bytes=_tpu_defaults()["vmem"]),
    )(qp, kp, vp)
    if Sp != S:
        out = out[:, :S]
    return out


# ----------------------------------------------------------------------------
# Model glue (plain JAX: embedding gathers, layer loop)
# ----------------------------------------------------------------------------

def transformer_block(p, x2, B, S):
    """x2: (B*S, D) bf16 -> (B*S, D) bf16 (post-norm ablation block)."""
    D = x2.shape[1]
    H = p["num_heads"]
    Dh = D // H

    # Fused Q/K/V projection: one (D, 3D) matmul reads x once.
    qkv = pallas_matmul(x2, p["wqkv"], out_dtype=jnp.bfloat16)       # (B*S, 3D)

    if Dh % 128 == 0:
        # Lane-aligned heads: attention reads/writes the fused layout directly;
        # no HBM head transposes.
        attn = pallas_flash_attention_fused(qkv.reshape(B, S, 3 * D), H, Dh)
        attn = attn.reshape(B * S, D)
    else:
        # TODO(synk): sub-128-lane head dims still need the XLA head transposes.
        qh = qkv.reshape(B, S, 3, H, Dh).transpose(2, 0, 3, 1, 4)
        qh = qh.reshape(3, B * H, S, Dh)
        attn = pallas_flash_attention(qh[0], qh[1], qh[2])           # (B*H, S, Dh)
        attn = attn.reshape(B, H, S, Dh).transpose(0, 2, 1, 3).reshape(B * S, D)

    # wo projection with fused post-norm: ln1(x + attn(x))   [drop1 = identity]
    h = pallas_matmul_res_norm(attn, p["wo"], x2, p["ln1"],
                               out_dtype=jnp.bfloat16)

    # FFN: gelu(h @ w1) @ w2 with fused post-norm ln2(h + ffn(h))  [drop2 = id]
    f = pallas_matmul(h, p["w1"], activation="gelu", out_dtype=jnp.bfloat16)
    h = pallas_matmul_res_norm(f, p["w2"], h, p["ln2"],
                               out_dtype=jnp.bfloat16)
    return h


def transformer_lm_forward(params, tokens):
    B, S = tokens.shape
    D = params["tok_emb"].shape[1]
    pos = jnp.arange(S)
    # Embedding lookups (gather) kept as plain-JAX glue; residual dropout = id.
    x = params["tok_emb"][tokens] + params["pos_emb"][pos][None, :, :]
    x2 = x.astype(jnp.bfloat16).reshape(B * S, D)
    for layer in params["layers"]:
        x2 = transformer_block(layer, x2, B, S)
    # ln_final fused into the lm_head matmul; f32 logits, lane-dense vocab tiles.
    logits = pallas_norm_matmul(x2, params["ln_final"], params["lm_head"],
                                out_dtype=jnp.float32)
    return logits.reshape(B, S, -1)


# ----------------------------------------------------------------------------
# Deterministic parameter initialization (weights stored bf16, norms f32)
# ----------------------------------------------------------------------------

def init_params(key, vocab_size, context_length, d_model, num_layers,
                num_heads, d_ff):
    def normal(k, shape, std=0.02):
        return (std * jax.random.normal(k, shape, dtype=jnp.float32)
                ).astype(jnp.bfloat16)

    keys = jax.random.split(key, 3 + num_layers)
    params = {
        "tok_emb": normal(keys[0], (vocab_size, d_model)),
        "pos_emb": normal(keys[1], (context_length, d_model)),
        "lm_head": normal(keys[2], (d_model, vocab_size)),    # stored (in, out)
        "ln_final": jnp.ones((d_model,), jnp.float32),
        "layers": [],
    }
    for li in range(num_layers):
        lk = jax.random.split(keys[3 + li], 6)
        wq = normal(lk[0], (d_model, d_model))
        wk = normal(lk[1], (d_model, d_model))
        wv = normal(lk[2], (d_model, d_model))
        params["layers"].append({
            "num_heads": num_heads,
            "wqkv": jnp.concatenate([wq, wk, wv], axis=1),     # fused (D, 3D)
            "wo": normal(lk[3], (d_model, d_model)),
            "w1": normal(lk[4], (d_model, d_ff)),
            "w2": normal(lk[5], (d_ff, d_model)),
            "ln1": jnp.ones((d_model,), jnp.float32),
            "ln2": jnp.ones((d_model,), jnp.float32),
        })
    return params


# ----------------------------------------------------------------------------

if __name__ == "__main__":
    def run_once(vocab_size, context_length, d_model, num_layers, num_heads,
                 d_ff, batch, seqlen):
        key = jax.random.PRNGKey(0)
        pkey, tkey = jax.random.split(key)
        params = init_params(pkey, vocab_size, context_length, d_model,
                             num_layers, num_heads, d_ff)
        tokens = jax.random.randint(tkey, (batch, seqlen), 0, vocab_size,
                                    dtype=jnp.int32)
        logits = transformer_lm_forward(params, tokens)
        logits = jax.block_until_ready(logits)
        assert logits.shape == (batch, seqlen, vocab_size)
        assert bool(jnp.all(jnp.isfinite(logits)))

    # Small config exercising the generic (head-split) attention path (Dh = 16).
    run_once(vocab_size=64, context_length=16, d_model=32, num_layers=2,
             num_heads=2, d_ff=64, batch=2, seqlen=8)
    # Lane-aligned config (Dh = 128) exercising the fused-layout attention path
    # (no head transposes) and the fused ln_final + lm_head kernel.
    run_once(vocab_size=64, context_length=16, d_model=256, num_layers=1,
             num_heads=2, d_ff=512, batch=2, seqlen=8)

    print("KERNEL_OK")
</pallas_src>

<mosaic_0001>
module attributes {stable_mosaic.version = 11 : i64} {
  func.func @_matmul_kernel(%arg0: i32, %arg1: i32, %arg2: i32, %arg3: memref<16x32xbf16, #tpu.memory_space<vmem>>, %arg4: memref<32x96xbf16, #tpu.memory_space<vmem>>, %arg5: memref<16x96xbf16, #tpu.memory_space<vmem>>, %arg6: memref<16x96xf32, #tpu.memory_space<vmem>>) attributes {dimension_semantics = [#tpu.dimension_semantics<parallel>, #tpu.dimension_semantics<parallel>, #tpu.dimension_semantics<arbitrary>], iteration_bounds = array<i64: 1, 1, 1>, scalar_prefetch = 0 : i64, scratch_operands = 1 : i64, tpu.core_type = #tpu.core_type<tc>, window_params = [{transform_indices = @transform_0, window_bounds = array<i64: 16, 32>}, {transform_indices = @transform_1, window_bounds = array<i64: 32, 96>}, {transform_indices = @transform_2, window_bounds = array<i64: 16, 96>}]} {
    %c0_i32 = arith.constant 0 : i32
    %0 = arith.cmpi eq, %arg2, %c0_i32 : i32
    %1 = arith.extui %0 : i1 to i32
    %c0_i32_0 = arith.constant 0 : i32
    %2 = arith.cmpi ne, %1, %c0_i32_0 : i32
    scf.if %2 {
      %cst_10 = arith.constant 0.000000e+00 : f32
      %12 = vector.broadcast %cst_10 : f32 to vector<16x96xf32>
      %c0_11 = arith.constant 0 : index
      %c0_12 = arith.constant 0 : index
      %13 = vector.load %arg6[%c0_11, %c0_12] : memref<16x96xf32, #tpu.memory_space<vmem>>, vector<16x96xf32>
      tpu.vector_store %arg6[%c0_11, %c0_12], %12 {strides = array<i32>} : memref<16x96xf32, #tpu.memory_space<vmem>>, vector<16x96xf32>,
    } else {
    }
    %c0 = arith.constant 0 : index
    %c0_1 = arith.constant 0 : index
    %3 = vector.load %arg6[%c0, %c0_1] : memref<16x96xf32, #tpu.memory_space<vmem>>, vector<16x96xf32>
    %c0_2 = arith.constant 0 : index
    %c0_3 = arith.constant 0 : index
    %4 = vector.load %arg3[%c0_2, %c0_3] : memref<16x32xbf16, #tpu.memory_space<vmem>>, vector<16x32xbf16>
    %c0_4 = arith.constant 0 : index
    %c0_5 = arith.constant 0 : index
    %5 = vector.load %arg4[%c0_4, %c0_5] : memref<32x96xbf16, #tpu.memory_space<vmem>>, vector<32x96xbf16>
    %cst = arith.constant dense<0.000000e+00> : vector<16x96xf32>
    %6 = tpu.matmul %4, %5, %cst {dimension_numbers = #tpu.dot_dimension_numbers<[1], [0], [0], [1], [0, 0, 1, 1], [], []>} : vector<16x32xbf16>, vector<32x96xbf16>, vector<16x96xf32> -> vector<16x96xf32>
    %7 = arith.addf %3, %6 : vector<16x96xf32>
    %c0_6 = arith.constant 0 : index
    %c0_7 = arith.constant 0 : index
    %8 = vector.load %arg6[%c0_6, %c0_7] : memref<16x96xf32, #tpu.memory_space<vmem>>, vector<16x96xf32>
    tpu.vector_store %arg6[%c0_6, %c0_7], %7 {strides = array<i32>} : memref<16x96xf32, #tpu.memory_space<vmem>>, vector<16x96xf32>,
    %c0_i32_8 = arith.constant 0 : i32
    %9 = arith.cmpi eq, %arg2, %c0_i32_8 : i32
    %10 = arith.extui %9 : i1 to i32
    %c0_i32_9 = arith.constant 0 : i32
    %11 = arith.cmpi ne, %10, %c0_i32_9 : i32
    scf.if %11 {
      %c0_10 = arith.constant 0 : index
      %c0_11 = arith.constant 0 : index
      %12 = vector.load %arg6[%c0_10, %c0_11] : memref<16x96xf32, #tpu.memory_space<vmem>>, vector<16x96xf32>
      %13 = arith.truncf %12 : vector<16x96xf32> to vector<16x96xbf16>
      %c0_12 = arith.constant 0 : index
      %c0_13 = arith.constant 0 : index
      %14 = vector.load %arg5[%c0_12, %c0_13] : memref<16x96xbf16, #tpu.memory_space<vmem>>, vector<16x96xbf16>
      tpu.vector_store %arg5[%c0_12, %c0_13], %13 {strides = array<i32>} : memref<16x96xbf16, #tpu.memory_space<vmem>>, vector<16x96xbf16>,
    } else {
    }
    return
  }
  func.func @transform_0(%arg0: i32, %arg1: i32, %arg2: i32) -> (i32, i32) {
    %c0_i32 = arith.constant 0 : i32
    return %arg0, %arg2 : i32, i32
  }
  func.func @transform_1(%arg0: i32, %arg1: i32, %arg2: i32) -> (i32, i32) {
    %c0_i32 = arith.constant 0 : i32
    return %arg2, %arg1 : i32, i32
  }
  func.func @transform_2(%arg0: i32, %arg1: i32, %arg2: i32) -> (i32, i32) {
    %c0_i32 = arith.constant 0 : i32
    return %arg0, %arg1 : i32, i32
  }
}

</mosaic_0001>

<bundles_post_ra>
// kernel: tpu_custom_call.1
= control target key start
LH: loop header
LB: loop body
LE: loop exit
PB: predicated region body
PF: predicated region fallthrough
CT: control target
= control target key end

     0   :  { %7 = vsyncpa [#allocation4], 0  ;;  %s329_s0 = inlined_call_operand.hbm [shape: bf16[16,32], index: 0, kind: input, shape index: {}]   ;;  %s330_s1 = inlined_call_operand.hbm [shape: bf16[32,96], index: 1, kind: input, shape index: {}]   ;;  %s331_s2 = inlined_call_operand.hbm [shape: bf16[16,96], index: 2, kind: output, shape index: {}]  }
   0x1   :  { %8 = vsyncpa [#allocation7], 0 }
   0x2   :  { %9 = vsyncpa [#allocation5], 0  ;;  %s258_s9 = smov [#allocation3]   ;;  %s186_s13 = scalar_lea.hbm %s329_s0, 128 }
   0x3   :  { %s15_s10 = sshll.u32 %s258_s9, 4  ;;  %p187_p0 = scmp.ne.s32.totalorder %s329_s0, %s186_s13  ;;  %s16_s10 = int_to_ptr.vmem [resolvable:$true] %s15_s10 }
   0x4   :  { %p190_p1 = scmp.lt.u32.totalorder %s186_s13, %s329_s0 }
   0x6   :  { %p192_p2 = pnand %p190_p1, %p187_p0 }
   0x8   :  { %195 = shalt.err (!%p192_p2)
}
   0x9   :  { %s196_s18 = scalar_lea.vmem %s16_s10, 128  ;;  %p201_p4 = scmp.lt.s32.totalorder %s16_s10, %s16_s10 }
   0xa   :  { %p197_p3 = scmp.ne.s32.totalorder %s16_s10, %s196_s18  ;;  %p202_p5 = scmp.lt.s32.totalorder %s196_s18, %s196_s18 }
   0xc   :  { %p203_p6 = por %p202_p5, %p201_p4 }
   0xe   :  { %p204_p7 = pnand %p203_p6, %p197_p3 }
  0x10   :  { %207 = shalt.err (!%p204_p7)
}
  0x11   :  { %s259_s19 = smov 64   ;;  %s260_s20 = smov 4  }
  0x12   :  { %21 = dma.hbm_to_vmem [thread:$0]  %s329_s0, 128, %s16_s10, [#allocation4], %s259_s19, %s259_s19, %s260_s20  }
  0x13   :  { %s261_s23 = smov [#allocation6]   ;;  %s208_s27 = scalar_lea.hbm %s330_s1, 256 }
  0x14   :  { %s27_s24 = sshll.u32 %s261_s23, 4  ;;  %p209_p8 = scmp.ne.s32.totalorder %s330_s1, %s208_s27  ;;  %s28_s24 = int_to_ptr.vmem [resolvable:$true] %s27_s24 }
  0x15   :  { %p212_p9 = scmp.lt.u32.totalorder %s208_s27, %s330_s1 }
  0x17   :  { %p214_p10 = pnand %p212_p9, %p209_p8 }
  0x19   :  { %217 = shalt.err (!%p214_p10)
}
  0x1a   :  { %s218_s4 = scalar_lea.vmem %s28_s24, 256  ;;  %p223_p12 = scmp.lt.s32.totalorder %s28_s24, %s28_s24 }
  0x1b   :  { %p219_p11 = scmp.ne.s32.totalorder %s28_s24, %s218_s4  ;;  %p224_p13 = scmp.lt.s32.totalorder %s218_s4, %s218_s4 }
  0x1d   :  { %p225_p0 = por %p224_p13, %p223_p12 }
  0x1f   :  { %p226_p1 = pnand %p225_p0, %p219_p11 }
  0x21   :  { %229 = shalt.err (!%p226_p1)
}
  0x22   :  { %33 = dma.hbm_to_vmem [thread:$0]  %s330_s1, 256, %s28_s24, [#allocation7], %s259_s19, %s259_s19, %s260_s20  }
  0x23   :  { %252 = dma.done.wait [#allocation4], 128  }
  0x24   :  { %253 = vsyncadd [#allocation4], 4294967168 }
  0x25   :  { %254 = dma.done.wait [#allocation7], 256  }
  0x26   :  { %255 = vsyncadd [#allocation7], 4294967040  ;;  %vm45_vm0 = vcmask 785408   ;;  %v262_v0 = vmov 0.0   ;;  %vm263_vm1 = vmmov 0   ;;  %v183_v1 = vld [vmem:[#allocation6] sm:$0xff]  }
  0x27   :  { %46 = vst.msk [vmem:[#allocation2] sm:$0xff] %vm45_vm0, %v262_v0  ;;  %47 = vst.msk [vmem:[#allocation2 + $0x8] sm:$0xff] %vm45_vm0, %v262_v0  ;;  %168 = vmatprep.subr.bf16.mxu0 %v262_v0  ;;  %172 = vmatprep.mubr.msk.bf16.mxu0 %vm263_vm1, %v262_v0  ;;  %v184_v2 = vld [vmem:[#allocation6 + $0x8] sm:$0xff]   ;;  %v185_v3 = vld [vmem:[#allocation3] sm:$0xff]   ;;  %vm73_vm2 = vcmask 261120   ;;  %vm136_vm3 = vcmask 781312  }
  0x28   :  { %169 = vmatpush3.bf16.msra.mxu0 %v183_v1  ;;  %s264_s1 = smov [#allocation8]  }
  0x29   :  { %170 = vmatprep.subr.bf16.mxu0 %v262_v0  ;;  %s144_s6 = sshll.u32 %s264_s1, 4  ;;  %s145_s6 = int_to_ptr.vmem [resolvable:$true] %s144_s6 }
  0x2a   :  { %s230_s7 = scalar_lea.vmem %s145_s6, 128  ;;  %p235_p3 = scmp.lt.s32.totalorder %s145_s6, %s145_s6 }
  0x2b   :  { %p231_p2 = scmp.ne.s32.totalorder %s145_s6, %s230_s7  ;;  %p236_p4 = scmp.lt.s32.totalorder %s230_s7, %s230_s7 }
  0x2c   :  { %171 = vmatpush3.bf16.msra.mxu0 %v184_v2 }
  0x2d   :  { %p237_p5 = por %p236_p4, %p235_p3 }
  0x2e   :  { %v48_v4 = vld [vmem:[#allocation2] sm:$0xff]  ;;  %v49_v6 = vld [vmem:[#allocation2 + $0x8] sm:$0xff] }
  0x2f   :  { %173 = vmatmul.mubr.msk.bf16.vlgmr.msra.gmra.mrb[0].mxu0 %vm73_vm2, %v185_v3  ;;  %p238_p6 = pnand %p237_p5, %p231_p2 }
 0x102   :  { %v111_v5 = vpop.f32.mrb[0].mxu0 }
 0x103   :  { %v118_v7 = vadd.f32 %v111_v5, %v48_v4  ;;  %v174_v8 = vpop.f32.mrb[1].mxu0 }
 0x104   :  { %v114_v9 = vpop.f32.mrb[2].mxu0 }
 0x105   :  { %121 = vst.msk [vmem:[#allocation2] sm:$0xff] %vm45_vm0, %v118_v7  ;;  %v119_v10 = vadd.f32 %v114_v9, %v49_v6  ;;  %v175_v11 = vpop.f32.mrb[3].mxu0 }
 0x107   :  { %122 = vst.msk [vmem:[#allocation2 + $0x8] sm:$0xff] %vm45_vm0, %v119_v10 }
 0x10c   :  { %v126_v12 = vld [vmem:[#allocation2] sm:$0xff] }
 0x10d   :  { %v163_v13 = vpack.c.bf16 %v126_v12, %v126_v12 }
 0x10e   :  { %v127_v14 = vld [vmem:[#allocation2 + $0x8] sm:$0xff] }
 0x10f   :  { %v164_v15 = vpack.c.bf16 %v127_v14, %v127_v14  ;;  %137 = vst.msk [vmem:[#allocation8] sm:$0xf] %vm136_vm3, %v163_v13 }
 0x111   :  { %138 = vst.msk [vmem:[#allocation8 + $0x4] sm:$0xf] %vm136_vm3, %v164_v15 }
 0x112   :  { %241 = shalt.err (!%p238_p6)
}
 0x113   :  { %s242_s10 = scalar_lea.hbm %s331_s2, 128 }
 0x114   :  { %p243_p7 = scmp.ne.s32.totalorder %s331_s2, %s242_s10  ;;  %p246_p8 = scmp.lt.u32.totalorder %s242_s10, %s331_s2 }
 0x116   :  { %p248_p9 = pnand %p246_p8, %p243_p7 }
 0x118   :  { %251 = shalt.err (!%p248_p9)
}
 0x119   :  { %150 = dma.vmem_to_hbm [thread:$0]  %s145_s6, 128, %s331_s2, [#allocation5], %s259_s19, %s259_s19, %s260_s20  }
 0x11a   :  { %256 = dma.done.wait [#allocation5], 128  }
 0x11b   :  { %257 = vsyncadd [#allocation5], 4294967168 }
 0x11c   :  { %154 = vsyncpa [#allocation4], 1 }
 0x11d   :  { %155 = vsyncpa [#allocation7], 1 }
 0x11e   :  { %156 = vsyncpa [#allocation5], 1 }

</bundles_post_ra>
